<compile_context>
chip_gen: v7x
topology: tpu7x:2x2x1
jax: 0.10.0
libtpu: 0.0.40
codegen_flags: <defaults>
</compile_context>

<pallas_src>
import functools

import jax
import jax.numpy as jnp
from jax.experimental import pallas as pl
from jax.experimental.pallas import tpu as pltpu


_LANE = 128
_SUBLANE = 8
_VMEM_LIMIT = 48 * 1024 * 1024      # < v7x physical 64 MiB, > default scoped limit


def _round_up(x, m):
    return ((x + m - 1) // m) * m


# ---------------------------------------------------------------------------
# Kernel: elementwise ReLu20 on one (tm, cols) VMEM tile (pure VPU work).
# ---------------------------------------------------------------------------
def _relu20_kernel(x_ref, o_ref):
    o_ref[...] = jnp.clip(x_ref[...], 0.0, 20.0)     # min(max(0, x), 20)


# ---------------------------------------------------------------------------
# Wrapper: flatten to a lane-dense (rows, cols) slab, tile rows, one launch.
# ---------------------------------------------------------------------------
def relu20(x):
    orig_shape = x.shape
    dtype = x.dtype
    n = x.size

    # Lane-dense layout: last dim a (large) multiple of 128 so stores are
    # full-vreg, unmasked vst's; rows a multiple of the 8-row sublane tile.
    cols = _LANE
    while cols < 4096 and n >= 2 * cols * _SUBLANE:
        cols *= 2
    rows = _round_up(pl.cdiv(n, cols), _SUBLANE)

    # Row tile: as big as comfortably fits VMEM (in + out, double-buffered).
    itemsize = jnp.dtype(dtype).itemsize
    max_tm = max(_SUBLANE, (_VMEM_LIMIT // 8) // (cols * itemsize))
    tm = min(rows, _round_up(min(max_tm, 1024), _SUBLANE))
    rows_p = _round_up(rows, tm)

    flat = x.reshape(-1)
    padded = rows_p * cols
    if padded > n:
        flat = jnp.pad(flat, (0, padded - n))
    x2d = flat.reshape(rows_p, cols)

    out = pl.pallas_call(
        _relu20_kernel,
        out_shape=jax.ShapeDtypeStruct((rows_p, cols), dtype),
        grid=(rows_p // tm,),
        in_specs=[pl.BlockSpec((tm, cols), lambda i: (i, 0))],
        out_specs=pl.BlockSpec((tm, cols), lambda i: (i, 0)),
        compiler_params=pltpu.CompilerParams(
            dimension_semantics=("parallel",),       # lets v7x use both TCs
            vmem_limit_bytes=_VMEM_LIMIT),
    )(x2d)

    return out.reshape(-1)[:n].reshape(orig_shape)


# ---------------------------------------------------------------------------
# Main
# ---------------------------------------------------------------------------
if __name__ == "__main__":
    key = jax.random.PRNGKey(0)
    # A small (N, C, H, W) activation like ReLu20 sees inside the ResCNN;
    # scaled so values land both below 0 and above 20.
    x = 15.0 * jax.random.normal(key, (2, 4, 16, 16), jnp.float32)

    fwd = jax.jit(relu20)
    out = fwd(x)
    jax.block_until_ready(out)

    ref = jnp.clip(x, 0.0, 20.0)                      # pure-JAX reference
    assert out.shape == x.shape, out.shape
    assert out.dtype == x.dtype, out.dtype
    assert bool(jnp.all(out == ref))
    assert bool(jnp.all(jnp.isfinite(out)))
    print("KERNEL_OK")
</pallas_src>

<mosaic_0001>
module attributes {stable_mosaic.version = 11 : i64} {
  func.func @_relu20_kernel(%arg0: i32, %arg1: memref<8x256xf32, #tpu.memory_space<vmem>>, %arg2: memref<8x256xf32, #tpu.memory_space<vmem>>) attributes {dimension_semantics = [#tpu.dimension_semantics<parallel>], iteration_bounds = array<i64: 1>, scalar_prefetch = 0 : i64, scratch_operands = 0 : i64, tpu.core_type = #tpu.core_type<tc>, window_params = [{transform_indices = @transform_0, window_bounds = array<i64: 8, 256>}, {transform_indices = @transform_1, window_bounds = array<i64: 8, 256>}]} {
    %c0 = arith.constant 0 : index
    %c0_0 = arith.constant 0 : index
    %0 = vector.load %arg1[%c0, %c0_0] : memref<8x256xf32, #tpu.memory_space<vmem>>, vector<8x256xf32>
    %cst = arith.constant 0.000000e+00 : f32
    %cst_1 = arith.constant 2.000000e+01 : f32
    %1 = vector.broadcast %cst : f32 to vector<8x256xf32>
    %2 = arith.maximumf %1, %0 : vector<8x256xf32>
    %3 = vector.broadcast %cst_1 : f32 to vector<8x256xf32>
    %4 = arith.minimumf %3, %2 : vector<8x256xf32>
    %c0_2 = arith.constant 0 : index
    %c0_3 = arith.constant 0 : index
    %5 = vector.load %arg2[%c0_2, %c0_3] : memref<8x256xf32, #tpu.memory_space<vmem>>, vector<8x256xf32>
    tpu.vector_store %arg2[%c0_2, %c0_3], %4 {strides = array<i32>} : memref<8x256xf32, #tpu.memory_space<vmem>>, vector<8x256xf32>,
    return
  }
  func.func @transform_0(%arg0: i32) -> (i32, i32) {
    %c0_i32 = arith.constant 0 : i32
    %c0_i32_0 = arith.constant 0 : i32
    return %arg0, %c0_i32 : i32, i32
  }
  func.func @transform_1(%arg0: i32) -> (i32, i32) {
    %c0_i32 = arith.constant 0 : i32
    %c0_i32_0 = arith.constant 0 : i32
    return %arg0, %c0_i32 : i32, i32
  }
}

</mosaic_0001>

<bundles_post_ra>
// kernel: relu20.1
= control target key start
LH: loop header
LB: loop body
LE: loop exit
PB: predicated region body
PF: predicated region fallthrough
CT: control target
= control target key end

     0   :  { %s42_s0 = inlined_call_operand.vmem [shape: f32[8,256], index: 0, kind: input, shape index: {}]   ;;  %s43_s1 = inlined_call_operand.vmem [shape: f32[8,256], index: 1, kind: output, shape index: {}]  }
   0x1   :  { %v8_v0 = vld [vmem:[%s42_s0] sm:$0xff]  ;;  %v9_v1 = vld [vmem:[%s42_s0 + $0x8] sm:$0xff] }
   0x2   :  { %v10_v2 = vmax.f32 %v8_v0, 0.0  ;;  %v11_v3 = vmax.f32 %v9_v1, 0.0 }
   0x4   :  { %v12_v4 = vmin.f32 %v10_v2, 20.0  ;;  %v13_v5 = vmin.f32 %v11_v3, 20.0 }
   0x6   :  { %14 = vst [vmem:[%s43_s1] sm:$0xff] %v12_v4  ;;  %15 = vst [vmem:[%s43_s1 + $0x8] sm:$0xff] %v13_v5 }

</bundles_post_ra>
